<compile_context>
chip_gen: v6e
topology: v6e:2x2x1
jax: 0.10.0
libtpu: 0.0.40
codegen_flags: <defaults>
</compile_context>

<pallas_src>
import jax
import jax.numpy as jnp
from jax.experimental import pallas as pl
from jax.experimental.pallas import tpu as pltpu


def _round_up(x: int, m: int) -> int:
    return ((x + m - 1) // m) * m


def _linear_kernel(x_ref, w_ref, b_ref, o_ref, acc_ref):
    """One (tm, tn) output tile; K-reduction runs along grid axis 2."""
    k = pl.program_id(2)

    @pl.when(k == 0)
    def _():
        # Fold the bias into the accumulator init: saves a VPU add + acc
        # read-modify at finalize (the only step contending with the store slot).
        acc_ref[...] = jnp.broadcast_to(b_ref[...], acc_ref.shape)

    acc_ref[...] += jnp.dot(
        x_ref[...], w_ref[...], preferred_element_type=jnp.float32
    )

    @pl.when(k == pl.num_programs(2) - 1)
    def _():
        o_ref[...] = acc_ref[...].astype(o_ref.dtype)


def _pad_params(w_t, b):
    """Pads/casts params once: w_t (K,N)->bf16 (Kp,Np), b -> f32 (1,Np).

    Np is a multiple of 128 (and of 512 when it exceeds 1024, so tn=512 tiles
    it evenly); Kp is a multiple of 128 (and of 1024 when it exceeds 1024).
    """
    K, N = w_t.shape
    Np = _round_up(N, 128)
    if Np > 1024:
        Np = _round_up(N, 512)
    Kp = _round_up(K, 128)
    if Kp > 1024:
        Kp = _round_up(K, 1024)
    w_p = w_t if (Kp == K and Np == N) else jnp.pad(w_t, ((0, Kp - K), (0, Np - N)))
    b2 = jnp.asarray(b, jnp.float32).reshape(1, -1)
    b_p = b2 if Np == N else jnp.pad(b2, ((0, 0), (0, Np - N)))
    return w_p.astype(jnp.bfloat16), b_p


@jax.jit
def linear_embedder_forward(x, w_t, b):
    """y = x @ w_t + b via a tiled Pallas matmul (bf16 MXU, f32 accumulate).

    Args:
      x:   (M, K) float32 activations (K <= Kp; padded to Kp with zeros here).
      w_t: (Kp, Np) bfloat16 pre-padded transposed weight (from _pad_params).
      b:   (1, Np) float32 pre-padded bias.
    Returns:
      (M, Np) float32; caller slices off the Np padding.
    """
    M, K = x.shape
    Kp, Np = w_t.shape
    assert Kp % 128 == 0 and Np % 128 == 0 and K <= Kp

    # Tile selection:
    #  - collapse the j axis when the padded embed_dim fits one column tile
    #    (x then streams from HBM exactly once),
    #  - tk up to 1024, tm up to 512 (bf16 min sublane tile is 16; 256/512 are
    #    multiples of the v6e/v7x 256x256 MXU),
    #  - with a collapsed j axis, cap tm at 256 for large batches so the
    #    'parallel' i axis has >=2 steps (v7x has 2 TensorCores per chip).
    tn = Np if Np <= 1024 else 512
    tk = Kp if Kp <= 1024 else 1024
    tm = min(512, _round_up(M, 16))
    if (Np // tn) == 1 and M >= 512:
        tm = 256
    Mp = _round_up(M, tm)

    # Pad x per call (zeros along K are sum-neutral) and cast to bf16.
    x_p = x if (Mp == M and Kp == K) else jnp.pad(x, ((0, Mp - M), (0, Kp - K)))
    x_p = x_p.astype(jnp.bfloat16)

    grid = (Mp // tm, Np // tn, Kp // tk)

    cost = pl.CostEstimate(
        flops=2 * Mp * Np * Kp,
        transcendentals=0,
        bytes_accessed=(
            2 * Mp * Kp * (Np // tn)      # bf16 x, re-read once per j block
            + 2 * Kp * Np * (Mp // tm)    # bf16 w, re-read once per i block
            + 4 * Mp * Np                 # f32 output write
            + 4 * Np                      # f32 bias
        ),
    )

    out_p = pl.pallas_call(
        _linear_kernel,
        out_shape=jax.ShapeDtypeStruct((Mp, Np), jnp.float32),
        grid=grid,
        in_specs=[
            pl.BlockSpec((tm, tk), lambda i, j, k: (i, k)),   # x tile (bf16)
            pl.BlockSpec((tk, tn), lambda i, j, k: (k, j)),   # w_t tile (bf16)
            pl.BlockSpec((1, tn), lambda i, j, k: (0, j)),    # bias tile (f32)
        ],
        out_specs=pl.BlockSpec((tm, tn), lambda i, j, k: (i, j)),
        scratch_shapes=[pltpu.VMEM((tm, tn), jnp.float32)],
        compiler_params=pltpu.CompilerParams(
            dimension_semantics=("parallel", "parallel", "arbitrary"),
            # Explicit budget: max double-buffered footprint here is ~12 MiB,
            # well under v7x's 64 MiB physical VMEM and v5e's defaults.
            vmem_limit_bytes=48 * 1024 * 1024,
        ),
        cost_estimate=cost,
    )(x_p, w_t, b)

    return out_p if Mp == M else out_p[:M]


class LinearEmbedder:
    """JAX/Pallas port of the PyTorch LinearEmbedder (wrapper around nn.Linear)."""

    def __init__(self, input_dim, embed_dim, key):
        self._embed_dim = embed_dim
        # Deterministic init matching nn.Linear's default:
        # U(-1/sqrt(input_dim), 1/sqrt(input_dim)) for both weight and bias.
        k_w, k_b = jax.random.split(key)
        bound = 1.0 / (float(input_dim) ** 0.5)
        # PyTorch weight is (embed_dim, input_dim); store transposed for the kernel.
        w = jax.random.uniform(
            k_w, (embed_dim, input_dim), jnp.float32, minval=-bound, maxval=bound
        )
        b = jax.random.uniform(
            k_b, (embed_dim,), jnp.float32, minval=-bound, maxval=bound
        )
        # Pad + cast ONCE at construction (no per-forward jnp.pad of the weight).
        self.w_t, self.b = _pad_params(jnp.asarray(w.T), b)   # bf16 (Kp,Np), f32 (1,Np)

    @property
    def embed_dim(self):
        return self._embed_dim

    def forward(self, inputs):
        """Embeds inputs, mirroring the PyTorch forward.

        Args:
          inputs: either an already-batched (batch, input_dim) array (preferred;
            avoids per-call host stacking / recompiles), or a list of
            (input_dim,) arrays / scalars (API parity with the spec).

        Returns:
          (batch, embed_dim) float32 array.
        """
        if isinstance(inputs, (list, tuple)):
            x = jnp.stack([jnp.asarray(v) for v in inputs])
        else:
            x = jnp.asarray(inputs)
        if x.ndim == 1:
            # Matches np.expand_dims(inputs, 1) in the reference (input_dim == 1).
            # TODO(synk): add a non-MXU fast path for K==1 (pure broadcast+add)
            # instead of padding K to 128.
            x = x[:, None]
        x = x.astype(jnp.float32)
        out = linear_embedder_forward(x, self.w_t, self.b)
        return out[:, : self._embed_dim]


if __name__ == "__main__":
    key = jax.random.PRNGKey(0)
    k_params, k_data, k_big = jax.random.split(key, 3)

    # --- Small case matching the module's typical use (list of (input_dim,) arrays) ---
    batch = 8
    input_dim = 32
    embed_dim = 32

    embedder = LinearEmbedder(input_dim, embed_dim, k_params)
    data = jax.random.normal(k_data, (batch, input_dim), jnp.float32)
    inputs = [data[i] for i in range(batch)]

    out = jax.block_until_ready(embedder.forward(inputs))
    assert out.shape == (batch, embed_dim)

    # Reference with the same bf16-input / f32-accumulate semantics as the MXU.
    w_used = embedder.w_t[:input_dim, :embed_dim].astype(jnp.float32)
    x_bf = data.astype(jnp.bfloat16).astype(jnp.float32)
    ref = (
        jnp.dot(x_bf, w_used, precision=jax.lax.Precision.HIGHEST)
        + embedder.b[:, :embed_dim]
    )
    assert jnp.allclose(out, ref, atol=1e-3, rtol=1e-3)

    # --- Larger case exercising the tiled grid + multi-step K reduction ---
    kx, kw, kb = jax.random.split(k_big, 3)
    Mb, Kb, Nb = 256, 2048, 256
    xb = jax.random.normal(kx, (Mb, Kb), jnp.float32)
    wb = jax.random.normal(kw, (Kb, Nb), jnp.float32) * 0.02
    bb = jax.random.normal(kb, (Nb,), jnp.float32)

    wb_p, bb_p = _pad_params(wb, bb)
    out_b = jax.block_until_ready(linear_embedder_forward(xb, wb_p, bb_p))[:, :Nb]
    ref_b = (
        jnp.dot(
            xb.astype(jnp.bfloat16).astype(jnp.float32),
            wb.astype(jnp.bfloat16).astype(jnp.float32),
            precision=jax.lax.Precision.HIGHEST,
        )
        + bb
    )
    assert out_b.shape == (Mb, Nb)
    assert jnp.allclose(out_b, ref_b, atol=5e-3, rtol=5e-3)

    print("KERNEL_OK")
</pallas_src>

<mosaic_0001>
module attributes {stable_mosaic.version = 11 : i64} {
  func.func @_linear_kernel(%arg0: i32, %arg1: i32, %arg2: i32, %arg3: memref<16x128xbf16, #tpu.memory_space<vmem>>, %arg4: memref<128x128xbf16, #tpu.memory_space<vmem>>, %arg5: memref<1x128xf32, #tpu.memory_space<vmem>>, %arg6: memref<16x128xf32, #tpu.memory_space<vmem>>, %arg7: memref<16x128xf32, #tpu.memory_space<vmem>>) attributes {dimension_semantics = [#tpu.dimension_semantics<parallel>, #tpu.dimension_semantics<parallel>, #tpu.dimension_semantics<arbitrary>], iteration_bounds = array<i64: 1, 1, 1>, scalar_prefetch = 0 : i64, scratch_operands = 1 : i64, tpu.core_type = #tpu.core_type<tc>, window_params = [{transform_indices = @transform_0, window_bounds = array<i64: 16, 128>}, {transform_indices = @transform_1, window_bounds = array<i64: 128, 128>}, {transform_indices = @transform_2, window_bounds = array<i64: 1, 128>}, {transform_indices = @transform_3, window_bounds = array<i64: 16, 128>}]} {
    %c0_i32 = arith.constant 0 : i32
    %0 = arith.cmpi eq, %arg2, %c0_i32 : i32
    %1 = arith.extui %0 : i1 to i32
    %c0_i32_0 = arith.constant 0 : i32
    %2 = arith.cmpi ne, %1, %c0_i32_0 : i32
    scf.if %2 {
      %c0_10 = arith.constant 0 : index
      %c0_11 = arith.constant 0 : index
      %12 = vector.load %arg5[%c0_10, %c0_11] : memref<1x128xf32, #tpu.memory_space<vmem>>, vector<1x128xf32>
      %13 = vector.shape_cast %12 : vector<1x128xf32> to vector<1x128xf32>
      %14 = vector.broadcast %13 : vector<1x128xf32> to vector<16x128xf32>
      %c0_12 = arith.constant 0 : index
      %c0_13 = arith.constant 0 : index
      %15 = vector.load %arg7[%c0_12, %c0_13] : memref<16x128xf32, #tpu.memory_space<vmem>>, vector<16x128xf32>
      tpu.vector_store %arg7[%c0_12, %c0_13], %14 {strides = array<i32>} : memref<16x128xf32, #tpu.memory_space<vmem>>, vector<16x128xf32>,
    } else {
    }
    %c0 = arith.constant 0 : index
    %c0_1 = arith.constant 0 : index
    %3 = vector.load %arg7[%c0, %c0_1] : memref<16x128xf32, #tpu.memory_space<vmem>>, vector<16x128xf32>
    %c0_2 = arith.constant 0 : index
    %c0_3 = arith.constant 0 : index
    %4 = vector.load %arg3[%c0_2, %c0_3] : memref<16x128xbf16, #tpu.memory_space<vmem>>, vector<16x128xbf16>
    %c0_4 = arith.constant 0 : index
    %c0_5 = arith.constant 0 : index
    %5 = vector.load %arg4[%c0_4, %c0_5] : memref<128x128xbf16, #tpu.memory_space<vmem>>, vector<128x128xbf16>
    %cst = arith.constant dense<0.000000e+00> : vector<16x128xf32>
    %6 = tpu.matmul %4, %5, %cst {dimension_numbers = #tpu.dot_dimension_numbers<[1], [0], [0], [1], [0, 0, 1, 1], [], []>} : vector<16x128xbf16>, vector<128x128xbf16>, vector<16x128xf32> -> vector<16x128xf32>
    %7 = arith.addf %3, %6 : vector<16x128xf32>
    %c0_6 = arith.constant 0 : index
    %c0_7 = arith.constant 0 : index
    %8 = vector.load %arg7[%c0_6, %c0_7] : memref<16x128xf32, #tpu.memory_space<vmem>>, vector<16x128xf32>
    tpu.vector_store %arg7[%c0_6, %c0_7], %7 {strides = array<i32>} : memref<16x128xf32, #tpu.memory_space<vmem>>, vector<16x128xf32>,
    %c0_i32_8 = arith.constant 0 : i32
    %9 = arith.cmpi eq, %arg2, %c0_i32_8 : i32
    %10 = arith.extui %9 : i1 to i32
    %c0_i32_9 = arith.constant 0 : i32
    %11 = arith.cmpi ne, %10, %c0_i32_9 : i32
    scf.if %11 {
      %c0_10 = arith.constant 0 : index
      %c0_11 = arith.constant 0 : index
      %12 = vector.load %arg7[%c0_10, %c0_11] : memref<16x128xf32, #tpu.memory_space<vmem>>, vector<16x128xf32>
      %c0_12 = arith.constant 0 : index
      %c0_13 = arith.constant 0 : index
      %13 = vector.load %arg6[%c0_12, %c0_13] : memref<16x128xf32, #tpu.memory_space<vmem>>, vector<16x128xf32>
      tpu.vector_store %arg6[%c0_12, %c0_13], %12 {strides = array<i32>} : memref<16x128xf32, #tpu.memory_space<vmem>>, vector<16x128xf32>,
    } else {
    }
    return
  }
  func.func @transform_0(%arg0: i32, %arg1: i32, %arg2: i32) -> (i32, i32) {
    %c0_i32 = arith.constant 0 : i32
    return %arg0, %arg2 : i32, i32
  }
  func.func @transform_1(%arg0: i32, %arg1: i32, %arg2: i32) -> (i32, i32) {
    %c0_i32 = arith.constant 0 : i32
    return %arg2, %arg1 : i32, i32
  }
  func.func @transform_2(%arg0: i32, %arg1: i32, %arg2: i32) -> (i32, i32) {
    %c0_i32 = arith.constant 0 : i32
    %c0_i32_0 = arith.constant 0 : i32
    return %c0_i32, %arg1 : i32, i32
  }
  func.func @transform_3(%arg0: i32, %arg1: i32, %arg2: i32) -> (i32, i32) {
    %c0_i32 = arith.constant 0 : i32
    return %arg0, %arg1 : i32, i32
  }
}

</mosaic_0001>

<bundles_post_ra>
// kernel: linear_embedder_forward.1
= control target key start
LH: loop header
LB: loop body
LE: loop exit
PB: predicated region body
PF: predicated region fallthrough
CT: control target
= control target key end

     0   :  { %8 = vsyncpa [#allocation4], 0  ;;  %s248_s12 = smov [#allocation3]   ;;  %s288_s0 = inlined_call_operand.vmem [shape: bf16[16,128], index: 0, kind: input, shape index: {}]   ;;  %s289_s1 = inlined_call_operand.hbm [shape: bf16[128,128], index: 1, kind: input, shape index: {}]   ;;  %s290_s2 = inlined_call_operand.vmem [shape: f32[1,128], index: 2, kind: input, shape index: {}]   ;;  %s291_s3 = inlined_call_operand.vmem [shape: f32[16,128], index: 3, kind: output, shape index: {}]  }
   0x1   :  { %s16_s13 = sshll.u32 %s248_s12, 4  ;;  %s17_s13 = int_to_ptr.vmem [resolvable:$true] %s16_s13 }
   0x2   :  { %s234_s14 = scalar_lea.vmem %s17_s13, 1024  ;;  %p239_p1 = scmp.lt.s32.totalorder %s17_s13, %s17_s13 }
   0x3   :  { %p235_p0 = scmp.ne.s32.totalorder %s17_s13, %s234_s14  ;;  %p240_p2 = scmp.lt.s32.totalorder %s234_s14, %s234_s14 }
   0x5   :  { %p241_p3 = por %p240_p2, %p239_p1 }
   0x7   :  { %p242_p4 = pnand %p241_p3, %p235_p0 }
   0x9   :  { %245 = shalt.err (!%p242_p4)
}
   0xa   :  { %s249_s15 = smov 64   ;;  %s250_s16 = smov 4  }
   0xb   :  { %22 = dma.hbm_to_vmem [thread:$0]  %s289_s1, 1024, %s17_s13, [#allocation4], %s249_s15, %s249_s15, %s250_s16  }
   0xc   :  { %246 = dma.done.wait [#allocation4], 1024  }
   0xd   :  { %247 = vsyncadd [#allocation4], 4294966272  ;;  %v251_v0 = vmov 0.0   ;;  %vm252_vm0 = vmmov 0   ;;  %v217_v1 = vld [vmem:[#allocation3 + $0x38] sm:$0xff]   ;;  %v218_v2 = vld [vmem:[#allocation3 + $0x30] sm:$0xff]  }
   0xe   :  { %192 = vmatprep.subr.bf16.mxu0 %v251_v0  ;;  %208 = vmatprep.mubr.msk.bf16.mxu0 %vm252_vm0, %v251_v0  ;;  %v219_v3 = vld [vmem:[#allocation3 + $0x28] sm:$0xff]   ;;  %v220_v4 = vld [vmem:[#allocation3 + $0x20] sm:$0xff]   ;;  %v221_v5 = vld [vmem:[#allocation3 + $0x18] sm:$0xff]  }
   0xf   :  { %193 = vmatpush3.bf16.msra.mxu0 %v217_v1  ;;  %v222_v6 = vld [vmem:[#allocation3 + $0x10] sm:$0xff]   ;;  %v223_v7 = vld [vmem:[#allocation3 + $0x8] sm:$0xff]   ;;  %v224_v8 = vld [vmem:[#allocation3] sm:$0xff]  }
  0x10   :  { %194 = vmatprep.subr.bf16.mxu0 %v251_v0  ;;  %v225_v9 = vld [vmem:[%s288_s0] sm:$0xff]  }
  0x11   :  { %v173_v10 = vld [vmem:[%s290_s2] ss:$0 sm:$0xff] }
  0x13   :  { %195 = vmatpush3.bf16.msra.mxu0 %v218_v2 }
  0x14   :  { %196 = vmatprep.subr.bf16.mxu0 %v251_v0 }
  0x17   :  { %197 = vmatpush3.bf16.msra.mxu0 %v219_v3 }
  0x18   :  { %198 = vmatprep.subr.bf16.mxu0 %v251_v0 }
  0x1b   :  { %199 = vmatpush3.bf16.msra.mxu0 %v220_v4 }
  0x1c   :  { %200 = vmatprep.subr.bf16.mxu0 %v251_v0 }
  0x1f   :  { %201 = vmatpush3.bf16.msra.mxu0 %v221_v5 }
  0x20   :  { %202 = vmatprep.subr.bf16.mxu0 %v251_v0 }
  0x23   :  { %203 = vmatpush3.bf16.msra.mxu0 %v222_v6 }
  0x24   :  { %204 = vmatprep.subr.bf16.mxu0 %v251_v0 }
  0x27   :  { %205 = vmatpush3.bf16.msra.mxu0 %v223_v7 }
  0x28   :  { %206 = vmatprep.subr.bf16.mxu0 %v251_v0 }
  0x2b   :  { %207 = vmatpush3.bf16.msra.mxu0 %v224_v8 }
  0x2e   :  { %209 = vmatmul.mubr.bf16.vlgmr.msra.gmra.mxu0 %v225_v9 }
  0xee   :  { %v150_v11 = vpop.f32.mrf.mxu0 }
  0xef   :  { %v157_v12 = vadd.f32 %v173_v10, %v150_v11 }
  0xf0   :  { %v210_v13 = vpop.f32.mrf.mxu0 }
  0xf1   :  { %166 = vst [vmem:[%s291_s3] sm:$0xff] %v157_v12 }
  0xf2   :  { %v153_v14 = vpop.f32.mrf.mxu0 }
  0xf3   :  { %v158_v15 = vadd.f32 %v173_v10, %v153_v14 }
  0xf4   :  { %v211_v16 = vpop.f32.mrf.mxu0 }
  0xf5   :  { %167 = vst [vmem:[%s291_s3 + $0x8] sm:$0xff] %v158_v15 }
  0xf6   :  { %172 = vsyncpa [#allocation4], 1 }

</bundles_post_ra>
